<compile_context>
chip_gen: v6e
topology: v6e:2x2x1
jax: 0.10.0
libtpu: 0.0.40
codegen_flags: <defaults>
</compile_context>

<pallas_src>
import jax
import jax.numpy as jnp
from jax.experimental import pallas as pl
from jax.experimental.pallas import tpu as pltpu

_LANE = 128


def _domain_adapter_kernel(x_ref, s_ref,
                           w_enc_ref, b_enc_ref,
                           w_head_ref, b_head_ref,
                           feat_ref, head_ref):
    # x_ref : (TB*N, F)   bf16 flattened node features for TB batch elements
    # s_ref : (TB, TB*N)  f32 block-diagonal scaled mask (mask / node_count)

    # --- encoder: one bf16 MXU matmul over all TB*N rows, bias + ReLU on VPU ---
    h = jnp.dot(x_ref[...], w_enc_ref[...],
                preferred_element_type=jnp.float32)            # (TB*N, Hp) f32
    h = jnp.maximum(h + b_enc_ref[...], 0.0)

    # --- masked mean pool = one small MXU matmul with the scaled-mask matrix ---
    pooled = jnp.dot(s_ref[...], h,
                     preferred_element_type=jnp.float32)       # (TB, Hp)

    # --- fused discriminator + classifier heads: single (TB,Hp)@(Hp,HW) matmul ---
    heads = jnp.dot(pooled, w_head_ref[...],
                    preferred_element_type=jnp.float32) + b_head_ref[...]

    feat_ref[...] = pooled     # (TB, Hp) lane-dense store
    head_ref[...] = heads      # (TB, HW) lane-dense store


def prepare_domain_adapter_params(w_enc, b_enc, w_dis, b_dis, w_cls, b_cls,
                                  *, mxu_dtype=jnp.bfloat16):
    """Init-time (hoisted) weight padding and dom/cls head fusion."""
    f32 = jnp.float32
    n_feat, hidden = w_enc.shape
    n_dom = w_dis.shape[1]
    n_cls = w_cls.shape[1]

    hp = max(_LANE, pl.cdiv(hidden, _LANE) * _LANE)            # padded hidden
    hw = max(_LANE, pl.cdiv(n_dom + n_cls, _LANE) * _LANE)     # padded fused heads

    w_enc_p = jnp.zeros((n_feat, hp), f32).at[:, :hidden].set(w_enc.astype(f32))
    b_enc_p = jnp.zeros((1, hp), f32).at[:, :hidden].set(
        b_enc.reshape(1, hidden).astype(f32))

    w_head = jnp.zeros((hp, hw), f32)
    w_head = w_head.at[:hidden, :n_dom].set(w_dis.astype(f32))
    w_head = w_head.at[:hidden, n_dom:n_dom + n_cls].set(w_cls.astype(f32))
    b_head = jnp.zeros((1, hw), f32)
    b_head = b_head.at[:, :n_dom].set(b_dis.reshape(1, n_dom).astype(f32))
    b_head = b_head.at[:, n_dom:n_dom + n_cls].set(
        b_cls.reshape(1, n_cls).astype(f32))

    return dict(
        w_enc=w_enc_p.astype(mxu_dtype),   # bf16 MXU operand
        b_enc=b_enc_p,                     # f32 (VPU)
        w_head=w_head,                     # f32 (tiny; heads stay f32)
        b_head=b_head,
        hidden=hidden, n_dom=n_dom, n_cls=n_cls, hp=hp, hw=hw,
        mxu_dtype=mxu_dtype,
    )


def _pick_batch_tile(bs, n_nodes, *, target_rows=512):
    # ~512 rows (TB*N) per grid step fills v6e/v7x 256-row MXU tiles and
    # amortizes the ~0.35us per-step overhead; small problems run in one step.
    tb = max(1, target_rows // max(1, n_nodes))
    if tb >= bs:
        return bs                       # single grid step
    return max(8, (tb // 8) * 8)        # tiled blocks need sublane-multiple rows


def domain_adapter_forward(node_feat, node_mask, params):
    f32 = jnp.float32
    bs, n_nodes, n_feat = node_feat.shape
    hp, hw = params["hp"], params["hw"]
    hidden, n_dom, n_cls = params["hidden"], params["n_dom"], params["n_cls"]
    mxu_dtype = params["mxu_dtype"]

    tb = _pick_batch_tile(bs, n_nodes)
    bs_pad = pl.cdiv(bs, tb) * tb
    if bs_pad != bs:
        pad = bs_pad - bs
        node_feat = jnp.concatenate(
            [node_feat, jnp.zeros((pad, n_nodes, n_feat), node_feat.dtype)], axis=0)
        node_mask = jnp.concatenate(
            [node_mask, jnp.zeros((pad, n_nodes), node_mask.dtype)], axis=0)

    # Exact pooling scale folded into the mask (no in-kernel divide), laid out
    # per batch tile as a block-diagonal matrix so pooling is one MXU matmul.
    m_scaled = node_mask.astype(f32) / (
        jnp.sum(node_mask.astype(f32), axis=1, keepdims=True) + 1e-6)  # (bs_pad, N)
    local = jnp.arange(bs_pad) % tb
    onehot = (jnp.arange(tb)[None, :] == local[:, None]).astype(f32)   # (bs_pad, TB)
    s_mat = jnp.einsum("gt,gn->gtn", onehot, m_scaled).reshape(bs_pad, tb * n_nodes)

    x_flat = node_feat.reshape(bs_pad * n_nodes, n_feat).astype(mxu_dtype)

    w_enc, b_enc = params["w_enc"], params["b_enc"]
    w_head, b_head = params["w_head"], params["b_head"]

    # Constant-index weight blocks: single-buffer them only when they are big
    # enough for double-buffering to matter (VMEM headroom on v7x's 64 MiB).
    weight_bytes = (w_enc.size * w_enc.dtype.itemsize
                    + w_head.size * w_head.dtype.itemsize
                    + b_enc.size * b_enc.dtype.itemsize
                    + b_head.size * b_head.dtype.itemsize)
    w_spec_kwargs = ({"pipeline_mode": pl.Buffered(1)}
                     if weight_bytes > (1 << 20) else {})

    grid = (bs_pad // tb,)

    # Explicit scoped-VMEM budget from the actual tile footprint (with margin)
    # so tiles that fit v6e's default don't OOM v5e's 16 MiB / v7x's 64 MiB.
    tile_bytes = (
        2 * tb * n_nodes * n_feat * x_flat.dtype.itemsize      # x (double buffered)
        + 2 * tb * (tb * n_nodes) * 4                          # S
        + 2 * tb * hp * 4 + 2 * tb * hw * 4                    # outputs
        + 2 * weight_bytes)
    vmem_limit = int(min(64 << 20, max(16 << 20, 2 * tile_bytes)))

    flops = (2 * bs_pad * n_nodes * n_feat * hp        # encoder matmul
             + 2 * bs_pad * (tb * n_nodes) * hp        # pooling matmul
             + 2 * bs_pad * hp * hw)                   # fused heads
    bytes_accessed = (x_flat.size * x_flat.dtype.itemsize + s_mat.size * 4
                      + weight_bytes + bs_pad * (hp + hw) * 4)

    feat_p, head_p = pl.pallas_call(
        _domain_adapter_kernel,
        out_shape=(
            jax.ShapeDtypeStruct((bs_pad, hp), f32),   # pooled features (padded)
            jax.ShapeDtypeStruct((bs_pad, hw), f32),   # fused dom+cls logits (padded)
        ),
        grid_spec=pltpu.PrefetchScalarGridSpec(
            num_scalar_prefetch=0,
            grid=grid,
            in_specs=[
                pl.BlockSpec((tb * n_nodes, n_feat), lambda b: (b, 0)),     # x
                pl.BlockSpec((tb, tb * n_nodes), lambda b: (b, 0)),         # S
                pl.BlockSpec((n_feat, hp), lambda b: (0, 0), **w_spec_kwargs),
                pl.BlockSpec((1, hp), lambda b: (0, 0), **w_spec_kwargs),
                pl.BlockSpec((hp, hw), lambda b: (0, 0), **w_spec_kwargs),
                pl.BlockSpec((1, hw), lambda b: (0, 0), **w_spec_kwargs),
            ],
            out_specs=[
                pl.BlockSpec((tb, hp), lambda b: (b, 0)),
                pl.BlockSpec((tb, hw), lambda b: (b, 0)),
            ],
        ),
        compiler_params=pltpu.CompilerParams(
            dimension_semantics=("parallel",),   # shards batch tiles over v7x's 2 TCs when grid > 1
            vmem_limit_bytes=vmem_limit),
        cost_estimate=pl.CostEstimate(
            flops=int(flops), transcendentals=0,
            bytes_accessed=int(bytes_accessed)),
    )(x_flat, s_mat, w_enc, b_enc, w_head, b_head)

    feats = feat_p[:bs, :hidden]
    dom = head_p[:bs, :n_dom]
    cls = head_p[:bs, n_dom:n_dom + n_cls]
    return feats, dom, cls


def _ref_forward(node_feat, node_mask, w_enc, b_enc, w_dis, b_dis, w_cls, b_cls,
                 mxu_dtype=jnp.bfloat16):
    # Pure-JAX reference; applies the same bf16 quantization to the encoder
    # MXU operands that the kernel uses (everything else is f32).
    f32 = jnp.float32
    xq = node_feat.astype(mxu_dtype).astype(f32)
    wq = w_enc.astype(mxu_dtype).astype(f32)
    h = jnp.maximum(jnp.einsum("bnf,fh->bnh", xq, wq) + b_enc, 0.0)
    pooled = jnp.einsum("bn,bnh->bh", node_mask, h) / (
        jnp.sum(node_mask, axis=1, keepdims=True) + 1e-6)
    dom = pooled @ w_dis + b_dis
    cls = pooled @ w_cls + b_cls
    return pooled, dom, cls


if __name__ == "__main__":
    key = jax.random.PRNGKey(0)
    bs, num_nodes, num_node_feat = 2, 16, 8
    hidden, num_domains, num_classes = 32, 2, 4

    ks = jax.random.split(key, 8)
    node_feat = jax.random.normal(ks[0], (bs, num_nodes, num_node_feat), jnp.float32)
    # deterministic mask: first 12 nodes valid for b=0, first 9 for b=1
    lens = jnp.array([12, 9])
    node_mask = (jnp.arange(num_nodes)[None, :] < lens[:, None]).astype(jnp.float32)

    w_enc = jax.random.normal(ks[1], (num_node_feat, hidden), jnp.float32) * 0.1
    b_enc = jax.random.normal(ks[2], (1, hidden), jnp.float32) * 0.1
    w_dis = jax.random.normal(ks[3], (hidden, num_domains), jnp.float32) * 0.1
    b_dis = jax.random.normal(ks[4], (1, num_domains), jnp.float32) * 0.1
    w_cls = jax.random.normal(ks[5], (hidden, num_classes), jnp.float32) * 0.1
    b_cls = jax.random.normal(ks[6], (1, num_classes), jnp.float32) * 0.1

    # init-time (hoisted) weight padding / head fusion
    params = prepare_domain_adapter_params(w_enc, b_enc, w_dis, b_dis, w_cls, b_cls)

    feats, dom_logits, cls_logits = domain_adapter_forward(node_feat, node_mask, params)
    jax.block_until_ready((feats, dom_logits, cls_logits))

    # Correctness check: the approx-reciprocal pooling error source is gone;
    # the only residual deltas are bf16 MXU operand quantization / matmul
    # accumulation differences, hence the modest tolerance.
    r_feats, r_dom, r_cls = _ref_forward(node_feat, node_mask, w_enc, b_enc,
                                         w_dis, b_dis, w_cls, b_cls)
    assert bool(jnp.allclose(feats, r_feats, atol=1e-2, rtol=1e-2))
    assert bool(jnp.allclose(dom_logits, r_dom, atol=1e-2, rtol=1e-2))
    assert bool(jnp.allclose(cls_logits, r_cls, atol=1e-2, rtol=1e-2))

    print("KERNEL_OK")
</pallas_src>

<mosaic_0001>
module attributes {stable_mosaic.version = 11 : i64} {
  func.func @_domain_adapter_kernel(%arg0: i32, %arg1: memref<32x8xbf16, #tpu.memory_space<vmem>>, %arg2: memref<2x32xf32, #tpu.memory_space<vmem>>, %arg3: memref<8x128xbf16, #tpu.memory_space<vmem>>, %arg4: memref<1x128xf32, #tpu.memory_space<vmem>>, %arg5: memref<128x128xf32, #tpu.memory_space<vmem>>, %arg6: memref<1x128xf32, #tpu.memory_space<vmem>>, %arg7: memref<2x128xf32, #tpu.memory_space<vmem>>, %arg8: memref<2x128xf32, #tpu.memory_space<vmem>>) attributes {dimension_semantics = [#tpu.dimension_semantics<parallel>], iteration_bounds = array<i64: 1>, scalar_prefetch = 0 : i64, scratch_operands = 0 : i64, tpu.core_type = #tpu.core_type<tc>, window_params = [{transform_indices = @transform_0, window_bounds = array<i64: 32, 8>}, {transform_indices = @transform_1, window_bounds = array<i64: 2, 32>}, {pipeline_mode = #tpu.pipeline_mode<synchronous>, transform_indices = @transform_2, window_bounds = array<i64: 8, 128>}, {pipeline_mode = #tpu.pipeline_mode<synchronous>, transform_indices = @transform_3, window_bounds = array<i64: 1, 128>}, {pipeline_mode = #tpu.pipeline_mode<synchronous>, transform_indices = @transform_4, window_bounds = array<i64: 128, 128>}, {pipeline_mode = #tpu.pipeline_mode<synchronous>, transform_indices = @transform_5, window_bounds = array<i64: 1, 128>}, {transform_indices = @transform_6, window_bounds = array<i64: 2, 128>}, {transform_indices = @transform_7, window_bounds = array<i64: 2, 128>}]} {
    %c0 = arith.constant 0 : index
    %c0_0 = arith.constant 0 : index
    %0 = vector.load %arg1[%c0, %c0_0] : memref<32x8xbf16, #tpu.memory_space<vmem>>, vector<32x8xbf16>
    %c0_1 = arith.constant 0 : index
    %c0_2 = arith.constant 0 : index
    %1 = vector.load %arg3[%c0_1, %c0_2] : memref<8x128xbf16, #tpu.memory_space<vmem>>, vector<8x128xbf16>
    %cst = arith.constant dense<0.000000e+00> : vector<32x128xf32>
    %2 = tpu.matmul %0, %1, %cst {dimension_numbers = #tpu.dot_dimension_numbers<[1], [0], [0], [1], [0, 0, 1, 1], [], []>} : vector<32x8xbf16>, vector<8x128xbf16>, vector<32x128xf32> -> vector<32x128xf32>
    %c0_3 = arith.constant 0 : index
    %c0_4 = arith.constant 0 : index
    %3 = vector.load %arg4[%c0_3, %c0_4] : memref<1x128xf32, #tpu.memory_space<vmem>>, vector<1x128xf32>
    %4 = vector.broadcast %3 : vector<1x128xf32> to vector<32x128xf32>
    %5 = arith.addf %2, %4 : vector<32x128xf32>
    %cst_5 = arith.constant 0.000000e+00 : f32
    %6 = vector.broadcast %cst_5 : f32 to vector<32x128xf32>
    %7 = arith.maximumf %5, %6 : vector<32x128xf32>
    %c0_6 = arith.constant 0 : index
    %c0_7 = arith.constant 0 : index
    %8 = vector.load %arg2[%c0_6, %c0_7] : memref<2x32xf32, #tpu.memory_space<vmem>>, vector<2x32xf32>
    %cst_8 = arith.constant dense<0.000000e+00> : vector<2x128xf32>
    %9 = tpu.matmul %8, %7, %cst_8 {dimension_numbers = #tpu.dot_dimension_numbers<[1], [0], [0], [1], [0, 0, 1, 1], [], []>} : vector<2x32xf32>, vector<32x128xf32>, vector<2x128xf32> -> vector<2x128xf32>
    %c0_9 = arith.constant 0 : index
    %c0_10 = arith.constant 0 : index
    %10 = vector.load %arg5[%c0_9, %c0_10] : memref<128x128xf32, #tpu.memory_space<vmem>>, vector<128x128xf32>
    %cst_11 = arith.constant dense<0.000000e+00> : vector<2x128xf32>
    %11 = tpu.matmul %9, %10, %cst_11 {dimension_numbers = #tpu.dot_dimension_numbers<[1], [0], [0], [1], [0, 0, 1, 1], [], []>} : vector<2x128xf32>, vector<128x128xf32>, vector<2x128xf32> -> vector<2x128xf32>
    %c0_12 = arith.constant 0 : index
    %c0_13 = arith.constant 0 : index
    %12 = vector.load %arg6[%c0_12, %c0_13] : memref<1x128xf32, #tpu.memory_space<vmem>>, vector<1x128xf32>
    %13 = vector.broadcast %12 : vector<1x128xf32> to vector<2x128xf32>
    %14 = arith.addf %11, %13 : vector<2x128xf32>
    %c0_14 = arith.constant 0 : index
    %c0_15 = arith.constant 0 : index
    %15 = vector.load %arg7[%c0_14, %c0_15] : memref<2x128xf32, #tpu.memory_space<vmem>>, vector<2x128xf32>
    tpu.vector_store %arg7[%c0_14, %c0_15], %9 {strides = array<i32>} : memref<2x128xf32, #tpu.memory_space<vmem>>, vector<2x128xf32>,
    %c0_16 = arith.constant 0 : index
    %c0_17 = arith.constant 0 : index
    %16 = vector.load %arg8[%c0_16, %c0_17] : memref<2x128xf32, #tpu.memory_space<vmem>>, vector<2x128xf32>
    tpu.vector_store %arg8[%c0_16, %c0_17], %14 {strides = array<i32>} : memref<2x128xf32, #tpu.memory_space<vmem>>, vector<2x128xf32>,
    return
  }
  func.func @transform_0(%arg0: i32) -> (i32, i32) {
    %c0_i32 = arith.constant 0 : i32
    %c0_i32_0 = arith.constant 0 : i32
    return %arg0, %c0_i32 : i32, i32
  }
  func.func @transform_1(%arg0: i32) -> (i32, i32) {
    %c0_i32 = arith.constant 0 : i32
    %c0_i32_0 = arith.constant 0 : i32
    return %arg0, %c0_i32 : i32, i32
  }
  func.func @transform_2(%arg0: i32) -> (i32, i32) {
    %c0_i32 = arith.constant 0 : i32
    %c0_i32_0 = arith.constant 0 : i32
    %c0_i32_1 = arith.constant 0 : i32
    return %c0_i32, %c0_i32_0 : i32, i32
  }
  func.func @transform_3(%arg0: i32) -> (i32, i32) {
    %c0_i32 = arith.constant 0 : i32
    %c0_i32_0 = arith.constant 0 : i32
    %c0_i32_1 = arith.constant 0 : i32
    return %c0_i32, %c0_i32_0 : i32, i32
  }
  func.func @transform_4(%arg0: i32) -> (i32, i32) {
    %c0_i32 = arith.constant 0 : i32
    %c0_i32_0 = arith.constant 0 : i32
    %c0_i32_1 = arith.constant 0 : i32
    return %c0_i32, %c0_i32_0 : i32, i32
  }
  func.func @transform_5(%arg0: i32) -> (i32, i32) {
    %c0_i32 = arith.constant 0 : i32
    %c0_i32_0 = arith.constant 0 : i32
    %c0_i32_1 = arith.constant 0 : i32
    return %c0_i32, %c0_i32_0 : i32, i32
  }
  func.func @transform_6(%arg0: i32) -> (i32, i32) {
    %c0_i32 = arith.constant 0 : i32
    %c0_i32_0 = arith.constant 0 : i32
    return %arg0, %c0_i32 : i32, i32
  }
  func.func @transform_7(%arg0: i32) -> (i32, i32) {
    %c0_i32 = arith.constant 0 : i32
    %c0_i32_0 = arith.constant 0 : i32
    return %arg0, %c0_i32 : i32, i32
  }
}

</mosaic_0001>

<bundles_post_ra>
// kernel: tpu_custom_call.1
= control target key start
LH: loop header
LB: loop body
LE: loop exit
PB: predicated region body
PF: predicated region fallthrough
CT: control target
= control target key end

     0   :  { %13 = vsyncpa [#allocation3], 0  ;;  %s583_s0 = inlined_call_operand.vmem [shape: bf16[32,8], index: 0, kind: input, shape index: {}]   ;;  %s584_s1 = inlined_call_operand.vmem [shape: f32[2,32], index: 1, kind: input, shape index: {}]   ;;  %s585_s2 = inlined_call_operand.vmem [shape: bf16[8,128], index: 2, kind: input, shape index: {}]   ;;  %s586_s3 = inlined_call_operand.vmem [shape: f32[1,128], index: 3, kind: input, shape index: {}]   ;;  %s587_s4 = inlined_call_operand.hbm [shape: f32[128,128], index: 4, kind: input, shape index: {}]   ;;  %s588_s5 = inlined_call_operand.vmem [shape: f32[1,128], index: 5, kind: input, shape index: {}]   ;;  %s589_s6 = inlined_call_operand.hbm [shape: f32[2,128], index: 6, kind: output, shape index: {0}]   ;;  %s590_s7 = inlined_call_operand.hbm [shape: f32[2,128], index: 7, kind: output, shape index: {1}]  }
   0x1   :  { %14 = vsyncpa [#allocation4], 0 }
   0x2   :  { %15 = vsyncpa [#allocation7], 0  ;;  %s487_s24 = smov [#allocation2]  }
   0x3   :  { %s29_s25 = sshll.u32 %s487_s24, 4  ;;  %s30_s25 = int_to_ptr.vmem [resolvable:$true] %s29_s25 }
   0x4   :  { %s429_s26 = scalar_lea.vmem %s30_s25, 2048  ;;  %p434_p1 = scmp.lt.s32.totalorder %s30_s25, %s30_s25 }
   0x5   :  { %p430_p0 = scmp.ne.s32.totalorder %s30_s25, %s429_s26  ;;  %p435_p2 = scmp.lt.s32.totalorder %s429_s26, %s429_s26 }
   0x7   :  { %p436_p3 = por %p435_p2, %p434_p1 }
   0x9   :  { %p437_p4 = pnand %p436_p3, %p430_p0 }
   0xb   :  { %440 = shalt.err (!%p437_p4)
}
   0xc   :  { %s488_s27 = smov 128   ;;  %s489_s28 = smov 8  }
   0xd   :  { %35 = dma.hbm_to_vmem [thread:$0]  %s587_s4, 2048, %s30_s25, [#allocation3], %s488_s27, %s488_s27, %s489_s28  }
   0xe   :  { %481 = dma.done.wait [#allocation3], 2048  }
   0xf   :  { %482 = vsyncadd [#allocation3], 4294965248  ;;  %vm71_vm0 = vcmask 1043456   ;;  %vm64_vm1 = vcmask 64512   ;;  %v46_v0 = vld [vmem:[%s585_s2] sm:$0xf] }
  0x10   :  { %411 = vmatprep.subr.msk.bf16.mxu1 %vm71_vm0, %v46_v0  ;;  %v73_v1 = vsel %vm71_vm0, %v46_v0, 0  ;;  %v419_v2 = vld [vmem:[%s583_s0] sm:$0xff]   ;;  %v420_v3 = vld [vmem:[%s583_s0 + $0x8] sm:$0xff]   ;;  %v490_v4 = vmov 0.0   ;;  %vm491_vm2 = vmmov 0   ;;  %v218_v5 = vld [vmem:[#allocation2 + $0x78] sm:$0xff] }
  0x11   :  { %360 = vmatpush3.bf16.msra.mxu1 %v73_v1  ;;  %361 = vmatprep.mubr.msk.bf16.mxu1 %vm64_vm1, %v419_v2  ;;  %v217_v6 = vld [vmem:[#allocation2 + $0x70] sm:$0xff]  ;;  %v216_v7 = vld [vmem:[#allocation2 + $0x68] sm:$0xff]  ;;  %v215_v8 = vld [vmem:[#allocation2 + $0x60] sm:$0xff]  ;;  %vm129_vm3 = vcmask 261120   ;;  %s492_s14 = smov [#allocation5]  }
  0x12   :  { %365 = vmatprep.subr.mxu1 %v490_v4  ;;  %376 = vmatprep.subr.mxu0 %v490_v4  ;;  %v214_v9 = vld [vmem:[#allocation2 + $0x58] sm:$0xff]  ;;  %v213_v10 = vld [vmem:[#allocation2 + $0x50] sm:$0xff]  ;;  %v212_v11 = vld [vmem:[#allocation2 + $0x48] sm:$0xff]  ;;  %s304_s15 = sshll.u32 %s492_s14, 4  ;;  %s305_s15 = int_to_ptr.vmem [resolvable:$true] %s304_s15 }
  0x13   :  { %408 = vmatprep.mubr.msk.f32.mxu0 %vm491_vm2, %v490_v4  ;;  %377 = vmatpush3.msra.mxu0 %v218_v5  ;;  %v211_v12 = vld [vmem:[#allocation2 + $0x40] sm:$0xff]  ;;  %v210_v13 = vld [vmem:[#allocation2 + $0x38] sm:$0xff]  ;;  %v209_v14 = vld [vmem:[#allocation2 + $0x30] sm:$0xff]  ;;  %s441_s16 = scalar_lea.vmem %s305_s15, 32  ;;  %p446_p6 = scmp.lt.s32.totalorder %s305_s15, %s305_s15 }
  0x14   :  { %362 = vmatmul.mubr.msk.bf16.vlgmr.msra.gmra.mxu1 %vm64_vm1, %v420_v3  ;;  %378 = vmatprep.subr.mxu0 %v490_v4  ;;  %v208_v15 = vld [vmem:[#allocation2 + $0x28] sm:$0xff]  ;;  %v207_v16 = vld [vmem:[#allocation2 + $0x20] sm:$0xff]  ;;  %v206_v17 = vld [vmem:[#allocation2 + $0x18] sm:$0xff]  ;;  %p442_p5 = scmp.ne.s32.totalorder %s305_s15, %s441_s16  ;;  %p447_p7 = scmp.lt.s32.totalorder %s441_s16, %s441_s16 }
  0x15   :  { %373 = vmatprep.mubr.msk.f32.mxu1 %vm491_vm2, %v490_v4  ;;  %379 = vmatpush3.msra.mxu0 %v217_v6  ;;  %v205_v18 = vld [vmem:[#allocation2 + $0x10] sm:$0xff]  ;;  %v204_v19 = vld [vmem:[#allocation2 + $0x8] sm:$0xff]  ;;  %v327_v21 = vld [vmem:[%s586_s3] ss:$0 sm:$0xff] }
  0x16   :  { %380 = vmatprep.subr.mxu0 %v490_v4  ;;  %v128_v33 = vld [vmem:[%s584_s1] sm:$0x3]  ;;  %p448_p8 = por %p447_p7, %p446_p6 }
  0x17   :  { %381 = vmatpush3.msra.mxu0 %v216_v7  ;;  %v203_v34 = vld [vmem:[#allocation2] sm:$0xff] }
  0x18   :  { %382 = vmatprep.subr.mxu0 %v490_v4  ;;  %p449_p9 = pnand %p448_p8, %p442_p5 }
  0x19   :  { %383 = vmatpush3.msra.mxu0 %v215_v8 }
  0x1a   :  { %384 = vmatprep.subr.mxu0 %v490_v4 }
  0x1b   :  { %385 = vmatpush3.msra.mxu0 %v214_v9 }
  0x1c   :  { %386 = vmatprep.subr.mxu0 %v490_v4 }
  0x1d   :  { %387 = vmatpush3.msra.mxu0 %v213_v10 }
  0x1e   :  { %388 = vmatprep.subr.mxu0 %v490_v4 }
  0x1f   :  { %389 = vmatpush3.msra.mxu0 %v212_v11 }
  0x20   :  { %390 = vmatprep.subr.mxu0 %v490_v4 }
  0x21   :  { %391 = vmatpush3.msra.mxu0 %v211_v12 }
  0x22   :  { %392 = vmatprep.subr.mxu0 %v490_v4 }
  0x23   :  { %393 = vmatpush3.msra.mxu0 %v210_v13 }
  0x24   :  { %394 = vmatprep.subr.mxu0 %v490_v4 }
  0x25   :  { %395 = vmatpush3.msra.mxu0 %v209_v14 }
  0x26   :  { %396 = vmatprep.subr.mxu0 %v490_v4 }
  0x27   :  { %397 = vmatpush3.msra.mxu0 %v208_v15 }
  0x28   :  { %398 = vmatprep.subr.mxu0 %v490_v4 }
  0x29   :  { %399 = vmatpush3.msra.mxu0 %v207_v16 }
  0x2a   :  { %400 = vmatprep.subr.mxu0 %v490_v4 }
  0x2b   :  { %401 = vmatpush3.msra.mxu0 %v206_v17 }
  0x2c   :  { %402 = vmatprep.subr.mxu0 %v490_v4 }
  0x2d   :  { %403 = vmatpush3.msra.mxu0 %v205_v18 }
  0x2e   :  { %404 = vmatprep.subr.mxu0 %v490_v4 }
  0x2f   :  { %405 = vmatpush3.msra.mxu0 %v204_v19 }
  0x30   :  { %406 = vmatprep.subr.mxu0 %v490_v4 }
  0x31   :  { %407 = vmatpush3.msra.mxu0 %v203_v34 }
  0xd4   :  { %v363_v20 = vpop.f32.mrf.mxu1 }
  0xd5   :  { %v118_v24 = vadd.f32 %v363_v20, %v327_v21 }
  0xd6   :  { %v109_v22 = vpop.f32.mrf.mxu1 }
  0xd7   :  { %v126_v29 = vmax.f32 %v118_v24, 0.0  ;;  %v110_v30 = vadd.f32 %v327_v21, %v109_v22 }
  0xd8   :  { %v364_v23 = vpop.f32.mrf.mxu1 }
  0xd9   :  { %v121_v25 = vadd.f32 %v364_v23, %v327_v21  ;;  %v124_v32 = vmax.f32 %v110_v30, 0.0 }
  0xda   :  { %v112_v26 = vpop.f32.mrf.mxu1 }
  0xdb   :  { %v127_v27 = vmax.f32 %v121_v25, 0.0  ;;  %v113_v28 = vadd.f32 %v327_v21, %v112_v26 }
  0xdd   :  { %366 = vmatpush3.msra.mxu1 %v127_v27  ;;  %v125_v31 = vmax.f32 %v113_v28, 0.0 }
  0xde   :  { %367 = vmatprep.subr.mxu1 %v490_v4 }
  0xdf   :  { %368 = vmatpush3.msra.mxu1 %v126_v29 }
  0xe0   :  { %369 = vmatprep.subr.mxu1 %v490_v4 }
  0xe1   :  { %370 = vmatpush3.msra.mxu1 %v125_v31 }
  0xe2   :  { %371 = vmatprep.subr.mxu1 %v490_v4 }
  0xe3   :  { %372 = vmatpush3.msra.mxu1 %v124_v32 }
  0xe4   :  { %374 = vmatmul.mubr.msk.f32.vlgmr.msra.gmra.mxu1 %vm129_vm3, %v128_v33 }
 0x1a4   :  { %v199_v35 = vpop.f32.mrf.mxu1 }
 0x1a5   :  { %296 = vst [vmem:[#allocation5] sm:$0x3] %v199_v35  ;;  %409 = vmatmul.mubr.f32.vlgmr.msra.gmra.mxu0 %v199_v35 }
 0x1a6   :  { %v375_v36 = vpop.f32.mrf.mxu1 }
 0x1a7   :  { %452 = shalt.err (!%p449_p9)
}
 0x1a8   :  { %307 = dma.vmem_to_hbm [thread:$0]  %s305_s15, 32, %s589_s6, [#allocation4]   ;;  %v333_v37 = vld [vmem:[%s588_s5] ss:$0 sm:$0xff] }
 0x1a9   :  { %s493_s20 = smov [#allocation6]  }
 0x1aa   :  { %s314_s21 = sshll.u32 %s493_s20, 4  ;;  %s315_s21 = int_to_ptr.vmem [resolvable:$true] %s314_s21 }
 0x1ab   :  { %s461_s22 = scalar_lea.vmem %s315_s21, 32  ;;  %p466_p11 = scmp.lt.s32.totalorder %s315_s21, %s315_s21 }
 0x1ac   :  { %p462_p10 = scmp.ne.s32.totalorder %s315_s21, %s461_s22  ;;  %p467_p12 = scmp.lt.s32.totalorder %s461_s22, %s461_s22 }
 0x1ae   :  { %p468_p13 = por %p467_p12, %p466_p11 }
 0x1b0   :  { %p469_p0 = pnand %p468_p13, %p462_p10 }
 0x265   :  { %v292_v38 = vpop.f32.mrf.mxu0 }
 0x266   :  { %v293_v39 = vadd.f32 %v333_v37, %v292_v38 }
 0x267   :  { %v410_v40 = vpop.f32.mrf.mxu0 }
 0x268   :  { %297 = vst [vmem:[#allocation6] sm:$0x3] %v293_v39 }
 0x269   :  { %472 = shalt.err (!%p469_p0)
}
 0x26a   :  { %317 = dma.vmem_to_hbm [thread:$0]  %s315_s21, 32, %s590_s7, [#allocation7]  }
 0x26b   :  { %483 = dma.done.wait [#allocation4], 32  }
 0x26c   :  { %484 = vsyncadd [#allocation4], 4294967264 }
 0x26d   :  { %485 = dma.done.wait [#allocation7], 32  }
 0x26e   :  { %486 = vsyncadd [#allocation7], 4294967264 }
 0x26f   :  { %324 = vsyncpa [#allocation3], 1 }
 0x270   :  { %325 = vsyncpa [#allocation4], 1 }
 0x271   :  { %326 = vsyncpa [#allocation7], 1 }

</bundles_post_ra>
